<compile_context>
chip_gen: v7x
topology: tpu7x:2x2x1
jax: 0.10.0
libtpu: 0.0.40
codegen_flags: <defaults>
</compile_context>

<pallas_src>
import jax
import jax.numpy as jnp
from jax import lax
from jax.experimental import pallas as pl
from jax.experimental.pallas import tpu as pltpu

HIDDEN = 20
H2 = 2 * HIDDEN  # 40


def _round_up(x, m):
    return ((x + m - 1) // m) * m


def _select_tile_b(batch, state_size, tile_max=4096, vmem_budget_bytes=12 << 20):
    """Pick a batch tile: big (amortize per-step overhead), lane-aligned,
    >= 2 tiles for B > 128 (v7x megacore), VMEM-budget aware (v5e 16 MiB)."""
    if batch <= 128:
        # Single tile; block == full array so the (8,128) rule is trivially met.
        return batch
    lanes = lambda n: _round_up(n, 128)
    # f32 bytes per batch row resident in VMEM (states + actions, double-buffered).
    per_row_bytes = 2 * 4 * (lanes(state_size) + lanes(HIDDEN))
    vmem_cap = max(128, ((vmem_budget_bytes // per_row_bytes) // 128) * 128)
    tile_max = min(tile_max, vmem_cap)
    # Aim for >= 2 tiles so both v7x TensorCores participate.
    return min(tile_max, _round_up(pl.cdiv(batch, 2), 128))


def critic_kernel(x_ref, a_ref, w13_ref, w2a_ref, w2b_ref, bslab_ref, bq_ref,
                  out_ref):
    # x_ref : [TILE_B, S]      states tile (streamed)
    # a_ref : [TILE_B, 20]     actions tile (streamed, no column padding)
    # w13   : [S, 40]          = [w1 | w3]                      (resident)
    # w2a   : [20, 40]         = [w2 | 0]   (actions path)       (resident)
    # w2b   : [40, 40]         = [[w2, 0], [0, I]]               (resident)
    # bslab : [3, 40]          rows: [b1|b3], [b2|0], [wq^T|wq^T] (resident)
    # bq    : [1, 1] (SMEM)    final scalar bias
    # out   : [1, TILE_B]      lane-dense Q row
    x = x_ref[...]
    a = a_ref[...]

    b13 = bslab_ref[0:1, :]   # [1, 40]
    b2b = bslab_ref[1:2, :]   # [1, 40]
    wqr = bslab_ref[2:3, :]   # [1, 40]

    # Layer 1 (fused net_1 / lin_states):  t = [ relu(x@w1+b1) | relu(x@w3+b3) ]
    t = jnp.dot(x, w13_ref[...], preferred_element_type=jnp.float32) + b13
    t = jnp.maximum(t, 0.0)

    # Layer 2 (fused net_2 / identity pass-through of lin_states), with the
    # "+ actions" folded into its own matmul: (h1 + a)@w2 == h1@w2 + a@w2.
    #   u = relu( t @ [[w2,0],[0,I]] + a @ [w2|0] + [b2|0] ) = [ h2 | ls ]
    # (the identity pass-through relies on relu(ls) == ls, which holds because
    #  lin_states output is itself a ReLU.)
    u = (jnp.dot(t, w2b_ref[...], preferred_element_type=jnp.float32)
         + jnp.dot(a, w2a_ref[...], preferred_element_type=jnp.float32)
         + b2b)
    u = jnp.maximum(u, 0.0)

    # Q_values, lane-dense:  q[1, TILE_B] = [wq|wq] @ u^T + bq  (NT matmul).
    q = lax.dot_general(wqr, u, (((1,), (1,)), ((), ())),
                        preferred_element_type=jnp.float32)
    out_ref[...] = q + bq_ref[0, 0]


def prepare_params(params):
    """One-time parameter packing (hoisted out of the per-call hot path)."""
    f32 = jnp.float32
    w1, b1 = params["w1"].astype(f32), params["b1"].astype(f32)
    w2, b2 = params["w2"].astype(f32), params["b2"].astype(f32)
    w3, b3 = params["w3"].astype(f32), params["b3"].astype(f32)
    wq, bq = params["wq"].astype(f32), params["bq"].astype(f32)

    w13 = jnp.concatenate([w1, w3], axis=1)                              # [S, 40]
    w2a = jnp.concatenate([w2, jnp.zeros((HIDDEN, HIDDEN), f32)], axis=1)  # [20, 40]
    w2b = jnp.zeros((H2, H2), f32)
    w2b = w2b.at[:HIDDEN, :HIDDEN].set(w2)
    w2b = w2b.at[HIDDEN:, HIDDEN:].set(jnp.eye(HIDDEN, dtype=f32))       # [40, 40]
    b13 = jnp.concatenate([b1, b3], axis=1)                              # [1, 40]
    b2b = jnp.concatenate([b2, jnp.zeros((1, HIDDEN), f32)], axis=1)     # [1, 40]
    wqr = jnp.concatenate([wq.T, wq.T], axis=1)                          # [1, 40]
    bslab = jnp.concatenate([b13, b2b, wqr], axis=0)                     # [3, 40]
    return dict(w13=w13, w2a=w2a, w2b=w2b, bslab=bslab, bq=bq.reshape(1, 1))


def critic_forward(states, actions, packed, *, tile_b=None):
    """Critic forward pass. `packed` comes from prepare_params(). Returns [B, 1]."""
    B, S = states.shape
    assert actions.shape == (B, HIDDEN), "actions must have shape [B, 20]"

    f32 = jnp.float32
    # No-op when the caller already provides float32 (no extra HBM pass).
    x = states.astype(f32)
    a = actions.astype(f32)

    if tile_b is None:
        tile_b = _select_tile_b(B, S)
    n_tiles = pl.cdiv(B, tile_b)
    # Only the (kernel-allocated) output is padded; inputs are NOT padded.
    B_pad = n_tiles * tile_b

    out = pl.pallas_call(
        critic_kernel,
        out_shape=jax.ShapeDtypeStruct((1, B_pad), f32),
        grid=(n_tiles,),
        in_specs=[
            pl.BlockSpec((tile_b, S), lambda i: (i, 0)),        # states tile
            pl.BlockSpec((tile_b, HIDDEN), lambda i: (i, 0)),   # actions tile
            pl.BlockSpec((S, H2), lambda i: (0, 0)),            # w13 (resident)
            pl.BlockSpec((HIDDEN, H2), lambda i: (0, 0)),       # w2a (resident)
            pl.BlockSpec((H2, H2), lambda i: (0, 0)),           # w2b (resident)
            pl.BlockSpec((3, H2), lambda i: (0, 0)),            # bias slab (resident)
            pl.BlockSpec(memory_space=pltpu.MemorySpace.SMEM),  # bq scalar
        ],
        out_specs=pl.BlockSpec((1, tile_b), lambda i: (0, i)),
        compiler_params=pltpu.CompilerParams(
            dimension_semantics=("parallel",)),
    )(x, a, packed["w13"], packed["w2a"], packed["w2b"], packed["bslab"],
      packed["bq"])

    return out.reshape(B_pad, 1)[:B, :]


def init_params(key, state_size):
    """nn.Linear-style init; weights stored [in_features, out_features]."""
    def linear(key, fan_in, fan_out):
        kw, kb = jax.random.split(key)
        bound = 1.0 / jnp.sqrt(fan_in)
        w = jax.random.uniform(kw, (fan_in, fan_out), jnp.float32, -bound, bound)
        b = jax.random.uniform(kb, (1, fan_out), jnp.float32, -bound, bound)
        return w, b

    k1, k2, k3, k4 = jax.random.split(key, 4)
    w1, b1 = linear(k1, state_size, HIDDEN)   # net_1
    w2, b2 = linear(k2, HIDDEN, HIDDEN)       # net_2
    w3, b3 = linear(k3, state_size, HIDDEN)   # lin_states
    wq, bq = linear(k4, HIDDEN, 1)            # Q_values
    return dict(w1=w1, b1=b1, w2=w2, b2=b2, w3=w3, b3=b3, wq=wq, bq=bq)


def critic_ref(states, actions, p):
    """Pure-JAX reference (unfused, original layer structure)."""
    h1 = jnp.maximum(states @ p["w1"] + p["b1"], 0.0)
    h1 = h1 + actions
    h2 = jnp.maximum(h1 @ p["w2"] + p["b2"], 0.0)
    ls = jnp.maximum(states @ p["w3"] + p["b3"], 0.0)
    h = h2 + ls
    return h @ p["wq"] + p["bq"]


if __name__ == "__main__":
    key = jax.random.PRNGKey(0)
    k_params, k_states, k_actions = jax.random.split(key, 3)

    batch = 8
    state_size = 32
    # actions must be [B, 20] because they are added to the 20-dim hidden.
    states = jax.random.normal(k_states, (batch, state_size), jnp.float32)
    actions = jax.random.normal(k_actions, (batch, HIDDEN), jnp.float32)

    params = init_params(k_params, state_size)
    packed = prepare_params(params)   # one-time packing, outside the hot path

    out = jax.block_until_ready(critic_forward(states, actions, packed))
    ref = critic_ref(states, actions, params)
    assert out.shape == (batch, 1)
    assert jnp.allclose(out, ref, atol=1e-4, rtol=1e-4), "mismatch vs reference"

    # Larger ragged batch: exercises the multi-tile grid (>=2 tiles for v7x)
    # and the partial last input block (garbage rows confined to sliced-off
    # output padding).
    batch2 = 300
    s2 = jax.random.normal(jax.random.PRNGKey(1), (batch2, state_size), jnp.float32)
    a2 = jax.random.normal(jax.random.PRNGKey(2), (batch2, HIDDEN), jnp.float32)
    out2 = jax.block_until_ready(critic_forward(s2, a2, packed))
    ref2 = critic_ref(s2, a2, params)
    assert out2.shape == (batch2, 1)
    assert jnp.allclose(out2, ref2, atol=1e-4, rtol=1e-4), "mismatch vs reference (tiled)"

    print("KERNEL_OK")
</pallas_src>

<mosaic_0001>
module attributes {stable_mosaic.version = 11 : i64} {
  func.func @critic_kernel(%arg0: i32, %arg1: memref<8x32xf32, #tpu.memory_space<vmem>>, %arg2: memref<8x20xf32, #tpu.memory_space<vmem>>, %arg3: memref<32x40xf32, #tpu.memory_space<vmem>>, %arg4: memref<20x40xf32, #tpu.memory_space<vmem>>, %arg5: memref<40x40xf32, #tpu.memory_space<vmem>>, %arg6: memref<3x40xf32, #tpu.memory_space<vmem>>, %arg7: memref<1x1xf32, #tpu.memory_space<smem>>, %arg8: memref<1x8xf32, #tpu.memory_space<vmem>>) attributes {dimension_semantics = [#tpu.dimension_semantics<parallel>], iteration_bounds = array<i64: 1>, scalar_prefetch = 0 : i64, scratch_operands = 0 : i64, tpu.core_type = #tpu.core_type<tc>, window_params = [{transform_indices = @transform_0, window_bounds = array<i64: 8, 32>}, {transform_indices = @transform_1, window_bounds = array<i64: 8, 20>}, {pipeline_mode = #tpu.pipeline_mode<synchronous>, transform_indices = @transform_2, window_bounds = array<i64: 32, 40>}, {pipeline_mode = #tpu.pipeline_mode<synchronous>, transform_indices = @transform_3, window_bounds = array<i64: 20, 40>}, {pipeline_mode = #tpu.pipeline_mode<synchronous>, transform_indices = @transform_4, window_bounds = array<i64: 40, 40>}, {pipeline_mode = #tpu.pipeline_mode<synchronous>, transform_indices = @transform_5, window_bounds = array<i64: 3, 40>}, {transform_indices = @transform_6, window_bounds = array<i64: 1, 1>}, {transform_indices = @transform_7, window_bounds = array<i64: 1, 8>}]} {
    %c0 = arith.constant 0 : index
    %c0_0 = arith.constant 0 : index
    %0 = vector.load %arg1[%c0, %c0_0] : memref<8x32xf32, #tpu.memory_space<vmem>>, vector<8x32xf32>
    %c0_1 = arith.constant 0 : index
    %c0_2 = arith.constant 0 : index
    %1 = vector.load %arg2[%c0_1, %c0_2] : memref<8x20xf32, #tpu.memory_space<vmem>>, vector<8x20xf32>
    %c0_3 = arith.constant 0 : index
    %c0_4 = arith.constant 0 : index
    %2 = vector.load %arg6[%c0_3, %c0_4] : memref<3x40xf32, #tpu.memory_space<vmem>>, vector<1x40xf32>
    %c1 = arith.constant 1 : index
    %c0_5 = arith.constant 0 : index
    %3 = vector.load %arg6[%c1, %c0_5] : memref<3x40xf32, #tpu.memory_space<vmem>>, vector<1x40xf32>
    %c2 = arith.constant 2 : index
    %c0_6 = arith.constant 0 : index
    %4 = vector.load %arg6[%c2, %c0_6] : memref<3x40xf32, #tpu.memory_space<vmem>>, vector<1x40xf32>
    %c0_7 = arith.constant 0 : index
    %c0_8 = arith.constant 0 : index
    %5 = vector.load %arg3[%c0_7, %c0_8] : memref<32x40xf32, #tpu.memory_space<vmem>>, vector<32x40xf32>
    %cst = arith.constant dense<0.000000e+00> : vector<8x40xf32>
    %6 = tpu.matmul %0, %5, %cst {dimension_numbers = #tpu.dot_dimension_numbers<[1], [0], [0], [1], [0, 0, 1, 1], [], []>} : vector<8x32xf32>, vector<32x40xf32>, vector<8x40xf32> -> vector<8x40xf32>
    %7 = vector.broadcast %2 : vector<1x40xf32> to vector<8x40xf32>
    %8 = arith.addf %6, %7 : vector<8x40xf32>
    %cst_9 = arith.constant 0.000000e+00 : f32
    %9 = vector.broadcast %cst_9 : f32 to vector<8x40xf32>
    %10 = arith.maximumf %8, %9 : vector<8x40xf32>
    %c0_10 = arith.constant 0 : index
    %c0_11 = arith.constant 0 : index
    %11 = vector.load %arg5[%c0_10, %c0_11] : memref<40x40xf32, #tpu.memory_space<vmem>>, vector<40x40xf32>
    %cst_12 = arith.constant dense<0.000000e+00> : vector<8x40xf32>
    %12 = tpu.matmul %10, %11, %cst_12 {dimension_numbers = #tpu.dot_dimension_numbers<[1], [0], [0], [1], [0, 0, 1, 1], [], []>} : vector<8x40xf32>, vector<40x40xf32>, vector<8x40xf32> -> vector<8x40xf32>
    %c0_13 = arith.constant 0 : index
    %c0_14 = arith.constant 0 : index
    %13 = vector.load %arg4[%c0_13, %c0_14] : memref<20x40xf32, #tpu.memory_space<vmem>>, vector<20x40xf32>
    %cst_15 = arith.constant dense<0.000000e+00> : vector<8x40xf32>
    %14 = tpu.matmul %1, %13, %cst_15 {dimension_numbers = #tpu.dot_dimension_numbers<[1], [0], [0], [1], [0, 0, 1, 1], [], []>} : vector<8x20xf32>, vector<20x40xf32>, vector<8x40xf32> -> vector<8x40xf32>
    %15 = arith.addf %12, %14 : vector<8x40xf32>
    %16 = vector.broadcast %3 : vector<1x40xf32> to vector<8x40xf32>
    %17 = arith.addf %15, %16 : vector<8x40xf32>
    %cst_16 = arith.constant 0.000000e+00 : f32
    %18 = vector.broadcast %cst_16 : f32 to vector<8x40xf32>
    %19 = arith.maximumf %17, %18 : vector<8x40xf32>
    %cst_17 = arith.constant dense<0.000000e+00> : vector<1x8xf32>
    %20 = tpu.matmul %4, %19, %cst_17 {dimension_numbers = #tpu.dot_dimension_numbers<[1], [1], [0], [0], [0, 0, 1, 0], [], []>} : vector<1x40xf32>, vector<8x40xf32>, vector<1x8xf32> -> vector<1x8xf32>
    %c0_18 = arith.constant 0 : index
    %c0_19 = arith.constant 0 : index
    %21 = memref.load %arg7[%c0_18, %c0_19] : memref<1x1xf32, #tpu.memory_space<smem>>
    %22 = vector.broadcast %21 : f32 to vector<1x8xf32>
    %23 = arith.addf %20, %22 : vector<1x8xf32>
    %c0_20 = arith.constant 0 : index
    %c0_21 = arith.constant 0 : index
    %24 = vector.load %arg8[%c0_20, %c0_21] : memref<1x8xf32, #tpu.memory_space<vmem>>, vector<1x8xf32>
    tpu.vector_store %arg8[%c0_20, %c0_21], %23 {strides = array<i32>} : memref<1x8xf32, #tpu.memory_space<vmem>>, vector<1x8xf32>,
    return
  }
  func.func @transform_0(%arg0: i32) -> (i32, i32) {
    %c0_i32 = arith.constant 0 : i32
    %c0_i32_0 = arith.constant 0 : i32
    return %arg0, %c0_i32 : i32, i32
  }
  func.func @transform_1(%arg0: i32) -> (i32, i32) {
    %c0_i32 = arith.constant 0 : i32
    %c0_i32_0 = arith.constant 0 : i32
    return %arg0, %c0_i32 : i32, i32
  }
  func.func @transform_2(%arg0: i32) -> (i32, i32) {
    %c0_i32 = arith.constant 0 : i32
    %c0_i32_0 = arith.constant 0 : i32
    %c0_i32_1 = arith.constant 0 : i32
    return %c0_i32, %c0_i32_0 : i32, i32
  }
  func.func @transform_3(%arg0: i32) -> (i32, i32) {
    %c0_i32 = arith.constant 0 : i32
    %c0_i32_0 = arith.constant 0 : i32
    %c0_i32_1 = arith.constant 0 : i32
    return %c0_i32, %c0_i32_0 : i32, i32
  }
  func.func @transform_4(%arg0: i32) -> (i32, i32) {
    %c0_i32 = arith.constant 0 : i32
    %c0_i32_0 = arith.constant 0 : i32
    %c0_i32_1 = arith.constant 0 : i32
    return %c0_i32, %c0_i32_0 : i32, i32
  }
  func.func @transform_5(%arg0: i32) -> (i32, i32) {
    %c0_i32 = arith.constant 0 : i32
    %c0_i32_0 = arith.constant 0 : i32
    %c0_i32_1 = arith.constant 0 : i32
    return %c0_i32, %c0_i32_0 : i32, i32
  }
  func.func @transform_6(%arg0: i32) -> (i32, i32) {
    %c0_i32 = arith.constant 0 : i32
    %c0_i32_0 = arith.constant 0 : i32
    %c0_i32_1 = arith.constant 0 : i32
    return %c0_i32, %c0_i32_0 : i32, i32
  }
  func.func @transform_7(%arg0: i32) -> (i32, i32) {
    %c0_i32 = arith.constant 0 : i32
    %c0_i32_0 = arith.constant 0 : i32
    return %c0_i32, %arg0 : i32, i32
  }
}

</mosaic_0001>

<bundles_post_ra>
// kernel: tpu_custom_call.1
= control target key start
LH: loop header
LB: loop body
LE: loop exit
PB: predicated region body
PF: predicated region fallthrough
CT: control target
= control target key end

     0   :  { %13 = vsyncpa [#allocation4], 0  ;;  %s820_s0 = inlined_call_operand.hbm [shape: f32[8,32], index: 0, kind: input, shape index: {}]   ;;  %s821_s1 = inlined_call_operand.hbm [shape: f32[8,20], index: 1, kind: input, shape index: {}]   ;;  %s822_s2 = inlined_call_operand.hbm [shape: f32[32,40], index: 2, kind: input, shape index: {}]   ;;  %s823_s3 = inlined_call_operand.hbm [shape: f32[20,40], index: 3, kind: input, shape index: {}]   ;;  %s824_s4 = inlined_call_operand.hbm [shape: f32[40,40], index: 4, kind: input, shape index: {}]   ;;  %s825_s5 = inlined_call_operand.vmem [shape: f32[3,40], index: 5, kind: input, shape index: {}]   ;;  %s826_s6 = inlined_call_operand.<no memory space> [shape: f32[1,1], index: 6, kind: input, shape index: {}]   ;;  %s827_s7 = inlined_call_operand.hbm [shape: f32[1,8], index: 7, kind: output, shape index: {}]  }
   0x1   :  { %14 = vsyncpa [#allocation7], 0 }
   0x2   :  { %15 = vsyncpa [#allocation10], 0 }
   0x3   :  { %16 = vsyncpa [#allocation5], 0  ;;  %s672_s24 = smov [#allocation6]   ;;  %s532_s28 = scalar_lea.hbm %s821_s1, 128 }
   0x4   :  { %s33_s25 = sshll.u32 %s672_s24, 4  ;;  %p533_p0 = scmp.ne.s32.totalorder %s821_s1, %s532_s28  ;;  %s34_s25 = int_to_ptr.vmem [resolvable:$true] %s33_s25 }
   0x5   :  { %p536_p1 = scmp.lt.u32.totalorder %s532_s28, %s821_s1 }
   0x7   :  { %p538_p2 = pnand %p536_p1, %p533_p0 }
   0x9   :  { %541 = shalt.err (!%p538_p2)
}
   0xa   :  { %s542_s10 = scalar_lea.vmem %s34_s25, 128  ;;  %p547_p4 = scmp.lt.s32.totalorder %s34_s25, %s34_s25 }
   0xb   :  { %p543_p3 = scmp.ne.s32.totalorder %s34_s25, %s542_s10  ;;  %p548_p5 = scmp.lt.s32.totalorder %s542_s10, %s542_s10 }
   0xd   :  { %p549_p6 = por %p548_p5, %p547_p4 }
   0xf   :  { %p550_p7 = pnand %p549_p6, %p543_p3 }
  0x11   :  { %553 = shalt.err (!%p550_p7)
}
  0x12   :  { %36 = dma.hbm_to_vmem [thread:$0]  %s821_s1, 128, %s34_s25, [#allocation7]  }
  0x13   :  { %s673_s13 = smov [#allocation9]   ;;  %s674_s15 = smov [#allocation3]  }
  0x14   :  { %s54_s14 = sshll.u32 %s673_s13, 4  ;;  %s23_s16 = sshll.u32 %s674_s15, 4  ;;  %s55_s14 = int_to_ptr.vmem [resolvable:$true] %s54_s14  ;;  %s24_s16 = int_to_ptr.vmem [resolvable:$true] %s23_s16 }
  0x15   :  { %s554_s19 = scalar_lea.hbm %s823_s3, 384 }
  0x16   :  { %p555_p8 = scmp.ne.s32.totalorder %s823_s3, %s554_s19  ;;  %p558_p9 = scmp.lt.u32.totalorder %s554_s19, %s823_s3 }
  0x18   :  { %p560_p10 = pnand %p558_p9, %p555_p8 }
  0x1a   :  { %563 = shalt.err (!%p560_p10)
}
  0x1b   :  { %s564_s1 = scalar_lea.vmem %s55_s14, 384  ;;  %p569_p12 = scmp.lt.s32.totalorder %s55_s14, %s55_s14 }
  0x1c   :  { %p565_p11 = scmp.ne.s32.totalorder %s55_s14, %s564_s1  ;;  %p570_p13 = scmp.lt.s32.totalorder %s564_s1, %s564_s1 }
  0x1e   :  { %p571_p0 = por %p570_p13, %p569_p12 }
  0x20   :  { %p572_p1 = pnand %p571_p0, %p565_p11 }
  0x22   :  { %575 = shalt.err (!%p572_p1)
}
  0x23   :  { %s675_s24 = smov 128   ;;  %s676_s25 = smov 8  }
  0x24   :  { %60 = dma.hbm_to_vmem [thread:$0]  %s823_s3, 384, %s55_s14, [#allocation10], %s675_s24, %s675_s24, %s676_s25  }
  0x25   :  { %s576_s30 = scalar_lea.hbm %s820_s0, 128 }
  0x26   :  { %p577_p2 = scmp.ne.s32.totalorder %s820_s0, %s576_s30  ;;  %p580_p3 = scmp.lt.u32.totalorder %s576_s30, %s820_s0 }
  0x28   :  { %p582_p4 = pnand %p580_p3, %p577_p2 }
  0x2a   :  { %585 = shalt.err (!%p582_p4)
}
  0x2b   :  { %s586_s12 = scalar_lea.vmem %s24_s16, 128  ;;  %p591_p6 = scmp.lt.s32.totalorder %s24_s16, %s24_s16 }
  0x2c   :  { %p587_p5 = scmp.ne.s32.totalorder %s24_s16, %s586_s12  ;;  %p592_p7 = scmp.lt.s32.totalorder %s586_s12, %s586_s12 }
  0x2e   :  { %p593_p8 = por %p592_p7, %p591_p6 }
  0x30   :  { %p594_p9 = pnand %p593_p8, %p587_p5 }
  0x32   :  { %597 = shalt.err (!%p594_p9)
}
  0x33   :  { %26 = dma.hbm_to_vmem [thread:$0]  %s820_s0, 128, %s24_s16, [#allocation4]  }
  0x34   :  { %s677_s14 = smov [#allocation8]   ;;  %s678_s17 = smov [#allocation11]  }
  0x35   :  { %s42_s15 = sshll.u32 %s677_s14, 4  ;;  %s66_s18 = sshll.u32 %s678_s17, 4  ;;  %s43_s15 = int_to_ptr.vmem [resolvable:$true] %s42_s15  ;;  %s67_s18 = int_to_ptr.vmem [resolvable:$true] %s66_s18 }
  0x36   :  { %s598_s21 = scalar_lea.hbm %s822_s2, 512 }
  0x37   :  { %p599_p10 = scmp.ne.s32.totalorder %s822_s2, %s598_s21  ;;  %p602_p11 = scmp.lt.u32.totalorder %s598_s21, %s822_s2 }
  0x39   :  { %p604_p12 = pnand %p602_p11, %p599_p10 }
  0x3b   :  { %607 = shalt.err (!%p604_p12)
}
  0x3c   :  { %s608_s0 = scalar_lea.vmem %s43_s15, 512  ;;  %p613_p0 = scmp.lt.s32.totalorder %s43_s15, %s43_s15 }
  0x3d   :  { %p609_p13 = scmp.ne.s32.totalorder %s43_s15, %s608_s0  ;;  %p614_p1 = scmp.lt.s32.totalorder %s608_s0, %s608_s0 }
  0x3f   :  { %p615_p2 = por %p614_p1, %p613_p0 }
  0x41   :  { %p616_p3 = pnand %p615_p2, %p609_p13 }
  0x43   :  { %619 = shalt.err (!%p616_p3)
}
  0x44   :  { %48 = dma.hbm_to_vmem [thread:$0]  %s822_s2, 512, %s43_s15, [#allocation7], %s675_s24, %s675_s24, %s676_s25  }
  0x45   :  { %s620_s30 = scalar_lea.hbm %s824_s4, 640 }
  0x46   :  { %p621_p4 = scmp.ne.s32.totalorder %s824_s4, %s620_s30  ;;  %p624_p5 = scmp.lt.u32.totalorder %s620_s30, %s824_s4 }
  0x48   :  { %p626_p6 = pnand %p624_p5, %p621_p4 }
  0x4a   :  { %629 = shalt.err (!%p626_p6)
}
  0x4b   :  { %s630_s12 = scalar_lea.vmem %s67_s18, 640  ;;  %p635_p8 = scmp.lt.s32.totalorder %s67_s18, %s67_s18 }
  0x4c   :  { %p631_p7 = scmp.ne.s32.totalorder %s67_s18, %s630_s12  ;;  %p636_p9 = scmp.lt.s32.totalorder %s630_s12, %s630_s12 }
  0x4e   :  { %p637_p10 = por %p636_p9, %p635_p8 }
  0x50   :  { %p638_p11 = pnand %p637_p10, %p631_p7 }
  0x52   :  { %641 = shalt.err (!%p638_p11)
}
  0x53   :  { %72 = dma.hbm_to_vmem [thread:$0]  %s824_s4, 640, %s67_s18, [#allocation10], %s675_s24, %s675_s24, %s676_s25  }
  0x54   :  { %664 = dma.done.wait [#allocation4], 128  }
  0x55   :  { %665 = vsyncadd [#allocation4], 4294967168 }
  0x56   :  { %666 = dma.done.wait [#allocation7], 640  }
  0x57   :  { %667 = vsyncadd [#allocation7], 4294966656 }
  0x58   :  { %668 = dma.done.wait [#allocation10], 1024  }
  0x59   :  { %669 = vsyncadd [#allocation10], 4294966272  ;;  %v679_v0 = vmov 0.0|0.0   ;;  %vm680_vm0 = vmmov 0   ;;  %v681_v1 = vmov 0.0   ;;  %v97_v2 = vld [vmem:[#allocation8] sm:$0xff]  ;;  %v347_v35 = vstv %s826_s6 }
  0x5a   :  { %506 = vmatprep.subr.bf16.mxu0 %v679_v0  ;;  %476 = vmatprep.mubr.msk.f32.mxu0 %vm680_vm0, %v681_v1  ;;  %v98_v3 = vld [vmem:[#allocation8 + $0x8] sm:$0xff]  ;;  %v99_v4 = vld [vmem:[#allocation8 + $0x10] sm:$0xff]  ;;  %v100_v6 = vld [vmem:[#allocation8 + $0x18] sm:$0xff]  ;;  %vm192_vm1 = vcmask 1043456   ;;  %vm105_vm2 = vcmask 261120   ;;  %vm188_vm3 = vcmask 162816  }
  0x5b   :  { %512 = vmatprep.subr.bf16.mxu1 %v679_v0  ;;  %485 = vmatprep.mubr.msk.f32.mxu1 %vm680_vm0, %v681_v1  ;;  %v507_v5 = vpack.c.bf16 %v98_v3, %v97_v2  ;;  %v185_v7 = vld [vmem:[#allocation9] sm:$0xff]  ;;  %v186_v8 = vld [vmem:[#allocation9 + $0x8] sm:$0xff]  ;;  %v510_v9 = vpack.c.bf16 %v100_v6, %v99_v4  ;;  %v180_v11 = vld [vmem:[#allocation11] sm:$0xff]  ;;  %vm266_vm4 = vcmask 326656   ;;  %s682_s19 = smov [#allocation12]   ;;  %vm424_vm5 = vcmask 57344  }
  0x5c   :  { %v513_v10 = vpack.c.bf16 %v186_v8, %v185_v7  ;;  %v181_v12 = vld [vmem:[#allocation11 + $0x8] sm:$0xff]  ;;  %v187_v13 = vld [vmem:[#allocation9 + $0x10] sm:$0xf]  ;;  %v93_v15 = vld [vmem:[#allocation6] sm:$0xff]  ;;  %s432_s20 = sshll.u32 %s682_s19, 4  ;;  %s433_s20 = int_to_ptr.vmem [resolvable:$true] %s432_s20 }
  0x5d   :  { %508 = vmatpush3.bf16.msra.mxu0 %v507_v5  ;;  %v92_v14 = vld [vmem:[#allocation3] sm:$0xff]  ;;  %v516_v16 = vpack.c.bf16 %v181_v12, %v180_v11  ;;  %v182_v17 = vld [vmem:[#allocation11 + $0x10] sm:$0xff]  ;;  %v184_v20 = vld [vmem:[#allocation11 + $0x20] sm:$0xff]  ;;  %s642_s21 = scalar_lea.vmem %s433_s20, 16  ;;  %s646_s22 = scalar_lea.vmem %s433_s20, 32 }
  0x5e   :  { %509 = vmatprep.subr.bf16.mxu0 %v679_v0  ;;  %514 = vmatpush3.bf16.msra.mxu1 %v513_v10  ;;  %v183_v18 = vld [vmem:[#allocation11 + $0x18] sm:$0xff]  ;;  %p643_p12 = scmp.ne.s32.totalorder %s433_s20, %s642_s21  ;;  %p647_p13 = scmp.lt.s32.totalorder %s433_s20, %s433_s20 }
  0x5f   :  { %483 = vmatprep.subr.mxu1 %v681_v1  ;;  %v519_v19 = vpack.c.bf16 %v183_v18, %v182_v17  ;;  %v443_v21 = vld [vmem:[%s825_s5] ss:$0 sm:$0xff]  ;;  %v448_v28 = vld [vmem:[%s825_s5 + $0x1] ss:$0 sm:$0xff]  ;;  %v96_v34 = vld [vmem:[%s825_s5 + $0x2] sm:$0x1]  ;;  %p648_p0 = scmp.lt.s32.totalorder %s646_s22, %s642_s21 }
  0x61   :  { %511 = vmatpush3.bf16.msra.mxu0 %v510_v9  ;;  %p649_p1 = por %p648_p0, %p647_p13 }
  0x62   :  { %501 = vmatprep.subr.mxu0 %v681_v1  ;;  %484 = vmatpush3.msk.msra.mxu1 %vm192_vm1, %v187_v13 }
  0x63   :  { %486 = vmatmul.mubr.msk.f32.vlgmr.msra.gmra.mrb[0].mxu1 %vm188_vm3, %v93_v15  ;;  %515 = vmatprep.subr.bf16.mxu1 %v679_v0  ;;  %p650_p2 = pnand %p649_p1, %p643_p12 }
  0x64   :  { %477 = vmatmul.mubr.msk.f32.vlgmr.msra.gmra.mrb[0].mxu0 %vm105_vm2, %v92_v14  ;;  %498 = vmatprep.mubr.msk.f32.mxu1 %vm680_vm0, %v681_v1 }
  0x65   :  { %517 = vmatpush3.bf16.msra.mxu1 %v516_v16  ;;  %503 = vmatprep.mubr.msk.f32.mxu0 %vm680_vm0, %v681_v1 }
  0x66   :  { %518 = vmatprep.subr.bf16.mxu1 %v679_v0 }
  0x69   :  { %520 = vmatpush3.bf16.msra.mxu1 %v519_v19 }
  0x6a   :  { %496 = vmatprep.subr.mxu1 %v681_v1 }
  0x6d   :  { %497 = vmatpush3.msra.mxu1 %v184_v20 }
 0x136   :  { %v262_v23 = vpop.f32.mrb[0].mxu1 }
 0x137   :  { %v175_v22 = vpop.f32.mrb[0].mxu0  ;;  %v487_v26 = vpop.f32.mrb[1].mxu1 }
 0x138   :  { %v176_v24 = vadd.f32 %v443_v21, %v175_v22  ;;  %v478_v25 = vpop.f32.mrb[1].mxu0 }
 0x13a   :  { %v179_v27 = vmax.f32 %v176_v24, 0.0 }
 0x13c   :  { %499 = vmatmul.mubr.msk.f32.vlgmr.msra.gmra.mrb[2].mxu1 %vm266_vm4, %v179_v27 }
 0x20f   :  { %v336_v29 = vpop.f32.mrb[2].mxu1 }
 0x210   :  { %v337_v30 = vadd.f32 %v336_v29, %v262_v23  ;;  %v500_v31 = vpop.f32.mrb[3].mxu1 }
 0x212   :  { %v344_v32 = vadd.f32 %v448_v28, %v337_v30 }
 0x214   :  { %v345_v33 = vmax.f32 %v344_v32, 0.0 }
 0x216   :  { %502 = vmatpush3.xpose.msk.msra.mxu0 %vm266_vm4, %v345_v33 }
 0x219   :  { %504 = vmatmul.mubr.msk.f32.vlgmr.msra.gmra.mrb[2].mxu0 %vm266_vm4, %v96_v34 }
 0x2ec   :  { %v420_v36 = vpop.f32.mrb[2].mxu0 }
 0x2ed   :  { %v421_v37 = vadd.f32 %v420_v36, %v347_v35  ;;  %v505_v38 = vpop.f32.mrb[3].mxu0 }
 0x2ef   :  { %425 = vst.msk [vmem:[#allocation12] sm:$0x1] %vm424_vm5, %v421_v37 }
 0x2f0   :  { %653 = shalt.err (!%p650_p2)
}
 0x2f1   :  { %s654_s6 = scalar_lea.hbm %s827_s7, 16 }
 0x2f2   :  { %p655_p3 = scmp.ne.s32.totalorder %s827_s7, %s654_s6  ;;  %p658_p4 = scmp.lt.u32.totalorder %s654_s6, %s827_s7 }
 0x2f4   :  { %p660_p5 = pnand %p658_p4, %p655_p3 }
 0x2f6   :  { %663 = shalt.err (!%p660_p5)
}
 0x2f7   :  { %435 = dma.vmem_to_hbm [thread:$0]  %s433_s20, 16, %s827_s7, [#allocation5]  }
 0x2f8   :  { %670 = dma.done.wait [#allocation5], 16  }
 0x2f9   :  { %671 = vsyncadd [#allocation5], 4294967280 }
 0x2fa   :  { %439 = vsyncpa [#allocation4], 1 }
 0x2fb   :  { %440 = vsyncpa [#allocation7], 1 }
 0x2fc   :  { %441 = vsyncpa [#allocation10], 1 }
 0x2fd   :  { %442 = vsyncpa [#allocation5], 1 }

</bundles_post_ra>
